<compile_context>
chip_gen: v5e
topology: v5e:2x2
jax: 0.10.0
libtpu: 0.0.40
codegen_flags: <defaults>
</compile_context>

<pallas_src>
import functools

import jax
import jax.numpy as jnp
from jax.experimental import pallas as pl
from jax.experimental.pallas import tpu as pltpu


def _round_up(n, m):
    return (n + m - 1) // m * m


def _cdiv(a, b):
    return -(-a // b)


def _sigmoid(z):
    # EUP-routed sigmoid (tanh lives in the otherwise-idle EUP slot; avoids the
    # full-precision divide that jax.nn.sigmoid can lower to on the VPU).
    return 0.5 * (jnp.tanh(0.5 * z) + 1.0)


def medium_mlp_kernel(x_ref, w1_ref, b1_ref, w2_ref, b2_ref, w3_ref, b3_ref, o_ref):
    # Linear1 (pooling folded into w1) + Sigmoid.  bf16 x bf16 on the MXU,
    # f32 accumulation; bias add + sigmoid math in f32.
    h1 = _sigmoid(jnp.dot(x_ref[...], w1_ref[...],
                          preferred_element_type=jnp.float32) + b1_ref[...])
    # Linear2 + Sigmoid
    h2 = _sigmoid(jnp.dot(h1.astype(jnp.bfloat16), w2_ref[...],
                          preferred_element_type=jnp.float32) + b2_ref[...])
    # Linear3 (output columns zero-padded to 128 lanes -> unmasked stores)
    out = jnp.dot(h2.astype(jnp.bfloat16), w3_ref[...],
                  preferred_element_type=jnp.float32) + b3_ref[...]
    o_ref[...] = out.astype(o_ref.dtype)


def _fold_pool_into_w1(w1, C, H, W):
    """Fold AvgPool2d(2)+Flatten into w1: (C*H2*W2, d_h1) -> (C*H*W, d_h1).

    Each pooled-input row is replicated over its 2x2 window and scaled by 1/4;
    rows for odd trailing spatial positions (floor-mode truncation) are zero.
    """
    H2, W2 = H // 2, W // 2
    d_h1 = w1.shape[1]
    w = w1.reshape(C, H2, W2, d_h1) * 0.25
    w = jnp.broadcast_to(w[:, :, None, :, None, :], (C, H2, 2, W2, 2, d_h1))
    w = w.reshape(C, 2 * H2, 2 * W2, d_h1)
    w = jnp.pad(w, ((0, 0), (0, H - 2 * H2), (0, W - 2 * W2), (0, 0)))
    return w.reshape(C * H * W, d_h1)


def prepare_params(params, input_shape):
    """One-time (outside jit) fold/pad/cast of module params into kernel layouts."""
    w1, b1, w2, b2, w3, b3 = params
    C, H, W = input_shape
    d_h2, d_out = w3.shape
    d_out_pad = _round_up(d_out, 128)  # lane-dense output stores

    w1_fold = _fold_pool_into_w1(w1.astype(jnp.float32), C, H, W).astype(jnp.bfloat16)
    w2_bf = w2.astype(jnp.bfloat16)
    w3_bf = jnp.zeros((d_h2, d_out_pad), jnp.bfloat16).at[:, :d_out].set(
        w3.astype(jnp.bfloat16))
    b3_p = jnp.zeros((1, d_out_pad), jnp.float32).at[:, :d_out].set(
        b3.reshape(1, -1).astype(jnp.float32))

    kparams = (w1_fold,
               b1.reshape(1, -1).astype(jnp.float32),
               w2_bf,
               b2.reshape(1, -1).astype(jnp.float32),
               w3_bf,
               b3_p)
    return kparams, d_out


def _choose_batch_tile(B):
    """Fat tiles to amortize per-step overhead; >=2 steps once padded B >= 32
    so v7x's second TensorCore gets work (harmless on single-TC v5e/v6e)."""
    b_pad0 = _round_up(max(B, 1), 16)        # bf16 sublane tile
    n_steps = _cdiv(b_pad0, 512)             # cap tile at 512 rows
    if b_pad0 >= 32:
        n_steps = max(n_steps, 2)
    tm = _round_up(_cdiv(b_pad0, n_steps), 16)
    b_pad = _round_up(b_pad0, tm)
    return tm, b_pad


@functools.partial(jax.jit, static_argnames=("d_out",))
def medium_mlp_forward(x, kparams, *, d_out):
    """Fused pooled-MLP forward: one pallas_call over batch tiles."""
    w1, b1, w2, b2, w3, b3 = kparams
    B = x.shape[0]
    d_in, d_h1 = w1.shape            # (C*H*W, 128)
    d_h2 = w2.shape[1]               # 64
    d_out_pad = w3.shape[1]          # 128

    # Flatten NCHW and cast to bf16 (pooling is folded into w1).
    x_flat = x.reshape(B, -1).astype(jnp.bfloat16)
    assert x_flat.shape[1] == d_in

    tm, b_pad = _choose_batch_tile(B)
    if b_pad > B:
        x_flat = jnp.pad(x_flat, ((0, b_pad - B), (0, 0)))

    const = lambda i: (0, 0)  # weights/biases resident across batch tiles
    out = pl.pallas_call(
        medium_mlp_kernel,
        out_shape=jax.ShapeDtypeStruct((b_pad, d_out_pad), jnp.float32),
        grid=(b_pad // tm,),
        in_specs=[
            pl.BlockSpec((tm, d_in), lambda i: (i, 0)),      # raw flattened x (bf16)
            pl.BlockSpec((d_in, d_h1), const),               # w1 (pool folded in)
            pl.BlockSpec((1, d_h1), const),                  # b1
            pl.BlockSpec((d_h1, d_h2), const),               # w2
            pl.BlockSpec((1, d_h2), const),                  # b2
            pl.BlockSpec((d_h2, d_out_pad), const),          # w3 (lane-padded)
            pl.BlockSpec((1, d_out_pad), const),             # b3 (lane-padded)
        ],
        out_specs=pl.BlockSpec((tm, d_out_pad), lambda i: (i, 0)),
        compiler_params=pltpu.CompilerParams(dimension_semantics=("parallel",)),
    )(x_flat, w1, b1, w2, b2, w3, b3)

    return out[:B, :d_out]


def medium_mlp_kernel_reference(x, kparams, d_out):
    """Pure-JAX mirror of the fused kernel (folded pool, bf16 MXU inputs, f32 acc)."""
    w1, b1, w2, b2, w3, b3 = kparams
    x_flat = x.reshape(x.shape[0], -1).astype(jnp.bfloat16)
    h1 = _sigmoid(jnp.dot(x_flat, w1, preferred_element_type=jnp.float32) + b1)
    h2 = _sigmoid(jnp.dot(h1.astype(jnp.bfloat16), w2,
                          preferred_element_type=jnp.float32) + b2)
    out = jnp.dot(h2.astype(jnp.bfloat16), w3,
                  preferred_element_type=jnp.float32) + b3
    return out[:, :d_out]


def medium_mlp_reference(x, params):
    """Pure-f32 JAX reference mirroring the PyTorch module exactly."""
    w1, b1, w2, b2, w3, b3 = params
    B, C, H, W = x.shape
    H2, W2 = H // 2, W // 2
    pooled = x[:, :, :2 * H2, :2 * W2].reshape(B, C, H2, 2, W2, 2)
    pooled = pooled.mean(axis=(3, 5)).reshape(B, -1)
    h = jax.nn.sigmoid(pooled @ w1 + b1)
    h = jax.nn.sigmoid(h @ w2 + b2)
    return h @ w3 + b3


def init_linear(key, fan_in, fan_out):
    """PyTorch nn.Linear default init: U(-1/sqrt(fan_in), 1/sqrt(fan_in))."""
    kw, kb = jax.random.split(key)
    bound = 1.0 / jnp.sqrt(jnp.float32(fan_in))
    w_t = jax.random.uniform(kw, (fan_in, fan_out), jnp.float32, -bound, bound)  # (in, out)
    b = jax.random.uniform(kb, (1, fan_out), jnp.float32, -bound, bound)
    return w_t, b


if __name__ == "__main__":
    B, C, H, W = 2, 4, 16, 16          # input_dim = C*H*W = 1024 -> linear1 in = 256
    out_dim = 10
    hidden_dim, hidden_dim2 = 128, 64
    pooled_dim = (C * H * W) // 4

    key = jax.random.PRNGKey(0)
    kx, k1, k2, k3 = jax.random.split(key, 4)

    x = jax.random.normal(kx, (B, C, H, W), jnp.float32)

    w1, b1 = init_linear(k1, pooled_dim, hidden_dim)
    w2, b2 = init_linear(k2, hidden_dim, hidden_dim2)
    w3, b3 = init_linear(k3, hidden_dim2, out_dim)
    params = (w1, b1, w2, b2, w3, b3)

    # One-time fold/pad/cast of params into kernel layouts (outside jit).
    kparams, d_out = prepare_params(params, (C, H, W))

    out = jax.block_until_ready(medium_mlp_forward(x, kparams, d_out=d_out))
    assert out.shape == (B, out_dim)

    # Tight check vs a reference that mirrors the kernel's fold + bf16 MXU inputs.
    ref_kernel_match = medium_mlp_kernel_reference(x, kparams, d_out)
    assert jnp.allclose(out, ref_kernel_match, rtol=1e-3, atol=1e-3), \
        "mismatch vs kernel-matched (bf16/folded) reference"

    # Loose check vs the exact f32 module semantics (bf16 rounding tolerance).
    ref_f32 = medium_mlp_reference(x, params)
    assert jnp.allclose(out, ref_f32, rtol=5e-2, atol=5e-2), \
        "mismatch vs f32 module reference"

    print("KERNEL_OK")
</pallas_src>

<mosaic_0001>
module attributes {stable_mosaic.version = 11 : i64} {
  func.func @medium_mlp_kernel(%arg0: i32, %arg1: memref<16x1024xbf16, #tpu.memory_space<vmem>>, %arg2: memref<1024x128xbf16, #tpu.memory_space<vmem>>, %arg3: memref<1x128xf32, #tpu.memory_space<vmem>>, %arg4: memref<128x64xbf16, #tpu.memory_space<vmem>>, %arg5: memref<1x64xf32, #tpu.memory_space<vmem>>, %arg6: memref<64x128xbf16, #tpu.memory_space<vmem>>, %arg7: memref<1x128xf32, #tpu.memory_space<vmem>>, %arg8: memref<16x128xf32, #tpu.memory_space<vmem>>) attributes {dimension_semantics = [#tpu.dimension_semantics<parallel>], iteration_bounds = array<i64: 1>, scalar_prefetch = 0 : i64, scratch_operands = 0 : i64, tpu.core_type = #tpu.core_type<tc>, window_params = [{transform_indices = @transform_0, window_bounds = array<i64: 16, 1024>}, {pipeline_mode = #tpu.pipeline_mode<synchronous>, transform_indices = @transform_1, window_bounds = array<i64: 1024, 128>}, {pipeline_mode = #tpu.pipeline_mode<synchronous>, transform_indices = @transform_2, window_bounds = array<i64: 1, 128>}, {pipeline_mode = #tpu.pipeline_mode<synchronous>, transform_indices = @transform_3, window_bounds = array<i64: 128, 64>}, {pipeline_mode = #tpu.pipeline_mode<synchronous>, transform_indices = @transform_4, window_bounds = array<i64: 1, 64>}, {pipeline_mode = #tpu.pipeline_mode<synchronous>, transform_indices = @transform_5, window_bounds = array<i64: 64, 128>}, {pipeline_mode = #tpu.pipeline_mode<synchronous>, transform_indices = @transform_6, window_bounds = array<i64: 1, 128>}, {transform_indices = @transform_7, window_bounds = array<i64: 16, 128>}]} {
    %c0 = arith.constant 0 : index
    %c0_0 = arith.constant 0 : index
    %0 = vector.load %arg1[%c0, %c0_0] : memref<16x1024xbf16, #tpu.memory_space<vmem>>, vector<16x1024xbf16>
    %c0_1 = arith.constant 0 : index
    %c0_2 = arith.constant 0 : index
    %1 = vector.load %arg2[%c0_1, %c0_2] : memref<1024x128xbf16, #tpu.memory_space<vmem>>, vector<1024x128xbf16>
    %cst = arith.constant dense<0.000000e+00> : vector<16x128xf32>
    %2 = tpu.matmul %0, %1, %cst {dimension_numbers = #tpu.dot_dimension_numbers<[1], [0], [0], [1], [0, 0, 1, 1], [], []>} : vector<16x1024xbf16>, vector<1024x128xbf16>, vector<16x128xf32> -> vector<16x128xf32>
    %c0_3 = arith.constant 0 : index
    %c0_4 = arith.constant 0 : index
    %3 = vector.load %arg3[%c0_3, %c0_4] : memref<1x128xf32, #tpu.memory_space<vmem>>, vector<1x128xf32>
    %4 = vector.broadcast %3 : vector<1x128xf32> to vector<16x128xf32>
    %5 = arith.addf %2, %4 : vector<16x128xf32>
    %cst_5 = arith.constant 5.000000e-01 : f32
    %6 = vector.broadcast %cst_5 : f32 to vector<16x128xf32>
    %7 = arith.mulf %6, %5 : vector<16x128xf32>
    %8 = math.tanh %7 : vector<16x128xf32>
    %cst_6 = arith.constant 1.000000e+00 : f32
    %9 = vector.broadcast %cst_6 : f32 to vector<16x128xf32>
    %10 = arith.addf %8, %9 : vector<16x128xf32>
    %cst_7 = arith.constant 5.000000e-01 : f32
    %11 = vector.broadcast %cst_7 : f32 to vector<16x128xf32>
    %12 = arith.mulf %11, %10 : vector<16x128xf32>
    %13 = arith.truncf %12 : vector<16x128xf32> to vector<16x128xbf16>
    %c0_8 = arith.constant 0 : index
    %c0_9 = arith.constant 0 : index
    %14 = vector.load %arg4[%c0_8, %c0_9] : memref<128x64xbf16, #tpu.memory_space<vmem>>, vector<128x64xbf16>
    %cst_10 = arith.constant dense<0.000000e+00> : vector<16x64xf32>
    %15 = tpu.matmul %13, %14, %cst_10 {dimension_numbers = #tpu.dot_dimension_numbers<[1], [0], [0], [1], [0, 0, 1, 1], [], []>} : vector<16x128xbf16>, vector<128x64xbf16>, vector<16x64xf32> -> vector<16x64xf32>
    %c0_11 = arith.constant 0 : index
    %c0_12 = arith.constant 0 : index
    %16 = vector.load %arg5[%c0_11, %c0_12] : memref<1x64xf32, #tpu.memory_space<vmem>>, vector<1x64xf32>
    %17 = vector.broadcast %16 : vector<1x64xf32> to vector<16x64xf32>
    %18 = arith.addf %15, %17 : vector<16x64xf32>
    %cst_13 = arith.constant 5.000000e-01 : f32
    %19 = vector.broadcast %cst_13 : f32 to vector<16x64xf32>
    %20 = arith.mulf %19, %18 : vector<16x64xf32>
    %21 = math.tanh %20 : vector<16x64xf32>
    %cst_14 = arith.constant 1.000000e+00 : f32
    %22 = vector.broadcast %cst_14 : f32 to vector<16x64xf32>
    %23 = arith.addf %21, %22 : vector<16x64xf32>
    %cst_15 = arith.constant 5.000000e-01 : f32
    %24 = vector.broadcast %cst_15 : f32 to vector<16x64xf32>
    %25 = arith.mulf %24, %23 : vector<16x64xf32>
    %26 = arith.truncf %25 : vector<16x64xf32> to vector<16x64xbf16>
    %c0_16 = arith.constant 0 : index
    %c0_17 = arith.constant 0 : index
    %27 = vector.load %arg6[%c0_16, %c0_17] : memref<64x128xbf16, #tpu.memory_space<vmem>>, vector<64x128xbf16>
    %cst_18 = arith.constant dense<0.000000e+00> : vector<16x128xf32>
    %28 = tpu.matmul %26, %27, %cst_18 {dimension_numbers = #tpu.dot_dimension_numbers<[1], [0], [0], [1], [0, 0, 1, 1], [], []>} : vector<16x64xbf16>, vector<64x128xbf16>, vector<16x128xf32> -> vector<16x128xf32>
    %c0_19 = arith.constant 0 : index
    %c0_20 = arith.constant 0 : index
    %29 = vector.load %arg7[%c0_19, %c0_20] : memref<1x128xf32, #tpu.memory_space<vmem>>, vector<1x128xf32>
    %30 = vector.broadcast %29 : vector<1x128xf32> to vector<16x128xf32>
    %31 = arith.addf %28, %30 : vector<16x128xf32>
    %c0_21 = arith.constant 0 : index
    %c0_22 = arith.constant 0 : index
    %32 = vector.load %arg8[%c0_21, %c0_22] : memref<16x128xf32, #tpu.memory_space<vmem>>, vector<16x128xf32>
    tpu.vector_store %arg8[%c0_21, %c0_22], %31 {strides = array<i32>} : memref<16x128xf32, #tpu.memory_space<vmem>>, vector<16x128xf32>,
    return
  }
  func.func @transform_0(%arg0: i32) -> (i32, i32) {
    %c0_i32 = arith.constant 0 : i32
    %c0_i32_0 = arith.constant 0 : i32
    return %arg0, %c0_i32 : i32, i32
  }
  func.func @transform_1(%arg0: i32) -> (i32, i32) {
    %c0_i32 = arith.constant 0 : i32
    %c0_i32_0 = arith.constant 0 : i32
    %c0_i32_1 = arith.constant 0 : i32
    return %c0_i32, %c0_i32_0 : i32, i32
  }
  func.func @transform_2(%arg0: i32) -> (i32, i32) {
    %c0_i32 = arith.constant 0 : i32
    %c0_i32_0 = arith.constant 0 : i32
    %c0_i32_1 = arith.constant 0 : i32
    return %c0_i32, %c0_i32_0 : i32, i32
  }
  func.func @transform_3(%arg0: i32) -> (i32, i32) {
    %c0_i32 = arith.constant 0 : i32
    %c0_i32_0 = arith.constant 0 : i32
    %c0_i32_1 = arith.constant 0 : i32
    return %c0_i32, %c0_i32_0 : i32, i32
  }
  func.func @transform_4(%arg0: i32) -> (i32, i32) {
    %c0_i32 = arith.constant 0 : i32
    %c0_i32_0 = arith.constant 0 : i32
    %c0_i32_1 = arith.constant 0 : i32
    return %c0_i32, %c0_i32_0 : i32, i32
  }
  func.func @transform_5(%arg0: i32) -> (i32, i32) {
    %c0_i32 = arith.constant 0 : i32
    %c0_i32_0 = arith.constant 0 : i32
    %c0_i32_1 = arith.constant 0 : i32
    return %c0_i32, %c0_i32_0 : i32, i32
  }
  func.func @transform_6(%arg0: i32) -> (i32, i32) {
    %c0_i32 = arith.constant 0 : i32
    %c0_i32_0 = arith.constant 0 : i32
    %c0_i32_1 = arith.constant 0 : i32
    return %c0_i32, %c0_i32_0 : i32, i32
  }
  func.func @transform_7(%arg0: i32) -> (i32, i32) {
    %c0_i32 = arith.constant 0 : i32
    %c0_i32_0 = arith.constant 0 : i32
    return %arg0, %c0_i32 : i32, i32
  }
}

</mosaic_0001>

<bundles_post_ra>
// kernel: medium_mlp_forward.1
= control target key start
LH: loop header
LB: loop body
LE: loop exit
PB: predicated region body
PF: predicated region fallthrough
CT: control target
= control target key end

     0   :  { %12 = vsyncpa [#allocation3], 0  ;;  %s1341_s27 = smov [#allocation2]   ;;  %s1342_s29 = smov 64   ;;  %s1486_s0 = inlined_call_operand.vmem [shape: bf16[16,1024], index: 0, kind: input, shape index: {}]   ;;  %s1487_s1 = inlined_call_operand.hbm [shape: bf16[1024,128], index: 1, kind: input, shape index: {}]   ;;  %s1488_s2 = inlined_call_operand.vmem [shape: f32[1,128], index: 2, kind: input, shape index: {}]   ;;  %s1489_s3 = inlined_call_operand.vmem [shape: bf16[128,64], index: 3, kind: input, shape index: {}]   ;;  %s1490_s4 = inlined_call_operand.vmem [shape: f32[1,64], index: 4, kind: input, shape index: {}]   ;;  %s1491_s5 = inlined_call_operand.vmem [shape: bf16[64,128], index: 5, kind: input, shape index: {}]   ;;  %s1492_s6 = inlined_call_operand.vmem [shape: f32[1,128], index: 6, kind: input, shape index: {}]   ;;  %s1493_s7 = inlined_call_operand.vmem [shape: f32[16,128], index: 7, kind: output, shape index: {}]  }
   0x1   :  { %s19_s26 = sshll.u32 %s1487_s1, 4  ;;  %s21_s28 = sshll.u32 %s1341_s27, 4  ;;  %s20_s26 = int_to_ptr.hbm [resolvable:$true] %s19_s26  ;;  %s22_s28 = int_to_ptr.vmem [resolvable:$true] %s21_s28 }
   0x2   :  { %s1343_s30 = smov 4  }
   0x3   :  { %27 = dma.hbm_to_vmem [thread:$0]  %s20_s26, 8192, %s22_s28, [#allocation3], %s1342_s29, %s1342_s29, %s1343_s30  }
   0x4   :  { %1339 = dma.done.wait [#allocation3], 8192  }
   0x5   :  { %1340 = vsyncadd [#allocation3], 4294959104  ;;  %v1232_v0 = vld [vmem:[#allocation2 + $0x38] sm:$0xff]  ;;  %v1231_v4 = vld [vmem:[#allocation2 + $0x30] sm:$0xff]  ;;  %vm855_vm0 = vcmask 523264  }
   0x6   :  { %v1240_v1 = vld [vmem:[#allocation2 + $0x78] sm:$0xff]  ;;  %607 = vmatpush.bf16.msra.mxu0 %v1232_v0  ;;  %v1239_v5 = vld [vmem:[#allocation2 + $0x70] sm:$0xff]  ;;  %v1230_v8 = vld [vmem:[#allocation2 + $0x28] sm:$0xff] }
   0x7   :  { %v1248_v2 = vld [vmem:[#allocation2 + $0xb8] sm:$0xff]  ;;  %621 = vmatpush.bf16.msra.mxu1 %v1240_v1  ;;  %v1247_v6 = vld [vmem:[#allocation2 + $0xb0] sm:$0xff]  ;;  %v1238_v9 = vld [vmem:[#allocation2 + $0x68] sm:$0xff] }
   0x8   :  { %v1256_v3 = vld [vmem:[#allocation2 + $0xf8] sm:$0xff]  ;;  %635 = vmatpush.bf16.msra.mxu2 %v1248_v2  ;;  %v1255_v7 = vld [vmem:[#allocation2 + $0xf0] sm:$0xff]  ;;  %v1246_v10 = vld [vmem:[#allocation2 + $0xa8] sm:$0xff] }
   0x9   :  { %649 = vmatpush.bf16.msra.mxu3 %v1256_v3  ;;  %v1254_v11 = vld [vmem:[#allocation2 + $0xe8] sm:$0xff]  ;;  %v1229_v12 = vld [vmem:[#allocation2 + $0x20] sm:$0xff]  ;;  %v1228_v16 = vld [vmem:[#allocation2 + $0x18] sm:$0xff] }
   0xa   :  { %608 = vmatpush.bf16.msra.mxu0 %v1231_v4  ;;  %v1237_v13 = vld [vmem:[#allocation2 + $0x60] sm:$0xff]  ;;  %v1236_v17 = vld [vmem:[#allocation2 + $0x58] sm:$0xff]  ;;  %v1227_v20 = vld [vmem:[#allocation2 + $0x10] sm:$0xff] }
   0xb   :  { %622 = vmatpush.bf16.msra.mxu1 %v1239_v5  ;;  %v1245_v14 = vld [vmem:[#allocation2 + $0xa0] sm:$0xff]  ;;  %v1244_v18 = vld [vmem:[#allocation2 + $0x98] sm:$0xff]  ;;  %v1235_v21 = vld [vmem:[#allocation2 + $0x50] sm:$0xff] }
   0xc   :  { %636 = vmatpush.bf16.msra.mxu2 %v1247_v6  ;;  %v1253_v15 = vld [vmem:[#allocation2 + $0xe0] sm:$0xff]  ;;  %v1252_v19 = vld [vmem:[#allocation2 + $0xd8] sm:$0xff]  ;;  %v1243_v22 = vld [vmem:[#allocation2 + $0x90] sm:$0xff] }
   0xd   :  { %650 = vmatpush.bf16.msra.mxu3 %v1255_v7  ;;  %v1251_v23 = vld [vmem:[#allocation2 + $0xd0] sm:$0xff]  ;;  %v1226_v24 = vld [vmem:[#allocation2 + $0x8] sm:$0xff]  ;;  %v1225_v28 = vld [vmem:[#allocation2] sm:$0xff] }
   0xe   :  { %609 = vmatpush.bf16.msra.mxu0 %v1230_v8  ;;  %v1234_v25 = vld [vmem:[#allocation2 + $0x48] sm:$0xff]  ;;  %v1233_v29 = vld [vmem:[#allocation2 + $0x40] sm:$0xff]  ;;  %v1264_v32 = vld [vmem:[#allocation2 + $0x138] sm:$0xff] }
   0xf   :  { %623 = vmatpush.bf16.msra.mxu1 %v1238_v9  ;;  %v1242_v26 = vld [vmem:[#allocation2 + $0x88] sm:$0xff]  ;;  %v1241_v30 = vld [vmem:[#allocation2 + $0x80] sm:$0xff]  ;;  %v1272_v33 = vld [vmem:[#allocation2 + $0x178] sm:$0xff] }
  0x10   :  { %637 = vmatpush.bf16.msra.mxu2 %v1246_v10  ;;  %v1250_v27 = vld [vmem:[#allocation2 + $0xc8] sm:$0xff]  ;;  %v1249_v31 = vld [vmem:[#allocation2 + $0xc0] sm:$0xff]  ;;  %v1280_v42 = vld [vmem:[#allocation2 + $0x1b8] sm:$0xff] }
  0x11   :  { %651 = vmatpush.bf16.msra.mxu3 %v1254_v11  ;;  %v890_v34 = vld [vmem:[%s1486_s0 + $0x8] sm:$0xf]  ;;  %v882_v36 = vld [vmem:[%s1486_s0] sm:$0xf]  ;;  %v1218_v38 = vld [vmem:[%s1486_s0 + $0xc] sm:$0xf] }
  0x12   :  { %610 = vmatpush.bf16.msra.mxu0 %v1229_v12  ;;  %v1222_v35 = vld [vmem:[%s1486_s0 + $0x24] sm:$0xf0]  ;;  %v1221_v37 = vld [vmem:[%s1486_s0 + $0x1c] sm:$0xf0]  ;;  %v892_v39 = vld [vmem:[%s1486_s0 + $0x28] sm:$0xf0] }
  0x13   :  { %624 = vmatpush.bf16.msra.mxu1 %v1237_v13  ;;  %v1217_v40 = vld [vmem:[%s1486_s0 + $0x4] sm:$0xf]  ;;  %v1288_v43 = vld [vmem:[#allocation2 + $0x1f8] sm:$0xff]  ;;  %v891_v44 = vor.u32 %v1222_v35, %v890_v34  ;;  %v883_v45 = vor.u32 %v1221_v37, %v882_v36  ;;  %v895_v46 = vor.u32 %v1218_v38, %v892_v39  ;;  %v1263_v48 = vld [vmem:[#allocation2 + $0x130] sm:$0xff] }
  0x14   :  { %638 = vmatpush.bf16.msra.mxu2 %v1245_v14  ;;  %v884_v41 = vld [vmem:[%s1486_s0 + $0x20] sm:$0xf0]  ;;  %v1271_v49 = vld [vmem:[#allocation2 + $0x170] sm:$0xff]  ;;  %v1262_v52 = vld [vmem:[#allocation2 + $0x128] sm:$0xff] }
  0x15   :  { %652 = vmatpush.bf16.msra.mxu3 %v1253_v15  ;;  %v887_v47 = vor.u32 %v1217_v40, %v884_v41  ;;  %v1279_v50 = vld [vmem:[#allocation2 + $0x1b0] sm:$0xff]  ;;  %v1270_v53 = vld [vmem:[#allocation2 + $0x168] sm:$0xff]  ;;  %v1261_v56 = vld [vmem:[#allocation2 + $0x120] sm:$0xff] }
  0x16   :  { %611 = vmatpush.bf16.msra.mxu0 %v1228_v16  ;;  %v1287_v51 = vld [vmem:[#allocation2 + $0x1f0] sm:$0xff]  ;;  %v1278_v54 = vld [vmem:[#allocation2 + $0x1a8] sm:$0xff]  ;;  %v1269_v57 = vld [vmem:[#allocation2 + $0x160] sm:$0xff] }
  0x17   :  { %625 = vmatpush.bf16.msra.mxu1 %v1236_v17  ;;  %v1286_v55 = vld [vmem:[#allocation2 + $0x1e8] sm:$0xff]  ;;  %v1277_v58 = vld [vmem:[#allocation2 + $0x1a0] sm:$0xff]  ;;  %v1260_v60 = vld [vmem:[#allocation2 + $0x118] sm:$0xff] }
  0x18   :  { %639 = vmatpush.bf16.msra.mxu2 %v1244_v18  ;;  %v1285_v59 = vld [vmem:[#allocation2 + $0x1e0] sm:$0xff]  ;;  %v1268_v61 = vld [vmem:[#allocation2 + $0x158] sm:$0xff]  ;;  %v1259_v0 = vld [vmem:[#allocation2 + $0x110] sm:$0xff] }
  0x19   :  { %653 = vmatpush.bf16.msra.mxu3 %v1252_v19  ;;  %v1276_v62 = vld [vmem:[#allocation2 + $0x198] sm:$0xff]  ;;  %v1267_v1 = vld [vmem:[#allocation2 + $0x150] sm:$0xff]  ;;  %v1258_v4 = vld [vmem:[#allocation2 + $0x108] sm:$0xff] }
  0x1a   :  { %612 = vmatpush.bf16.msra.mxu0 %v1227_v20  ;;  %v1284_v63 = vld [vmem:[#allocation2 + $0x1d8] sm:$0xff]  ;;  %v1275_v2 = vld [vmem:[#allocation2 + $0x190] sm:$0xff]  ;;  %v1266_v5 = vld [vmem:[#allocation2 + $0x148] sm:$0xff] }
  0x1b   :  { %626 = vmatpush.bf16.msra.mxu1 %v1235_v21  ;;  %v1283_v3 = vld [vmem:[#allocation2 + $0x1d0] sm:$0xff]  ;;  %v1274_v6 = vld [vmem:[#allocation2 + $0x188] sm:$0xff]  ;;  %v1257_v8 = vld [vmem:[#allocation2 + $0x100] sm:$0xff] }
  0x1c   :  { %640 = vmatpush.bf16.msra.mxu2 %v1243_v22  ;;  %v1282_v7 = vld [vmem:[#allocation2 + $0x1c8] sm:$0xff]  ;;  %v1265_v9 = vld [vmem:[#allocation2 + $0x140] sm:$0xff]  ;;  %v898_v12 = vld [vmem:[%s1486_s0 + $0x10] sm:$0xf] }
  0x1d   :  { %654 = vmatpush.bf16.msra.mxu3 %v1251_v23  ;;  %v1273_v10 = vld [vmem:[#allocation2 + $0x180] sm:$0xff]  ;;  %v1223_v13 = vld [vmem:[%s1486_s0 + $0x2c] sm:$0xf0]  ;;  %v1219_v14 = vld [vmem:[%s1486_s0 + $0x14] sm:$0xf] }
  0x1e   :  { %613 = vmatpush.bf16.msra.mxu0 %v1226_v24  ;;  %v1281_v11 = vld [vmem:[#allocation2 + $0x1c0] sm:$0xff]  ;;  %v900_v15 = vld [vmem:[%s1486_s0 + $0x30] sm:$0xf0]  ;;  %v906_v16 = vld [vmem:[%s1486_s0 + $0x18] sm:$0xf]  ;;  %v899_v20 = vor.u32 %v1223_v13, %v898_v12 }
  0x1f   :  { %627 = vmatpush.bf16.msra.mxu1 %v1234_v25  ;;  %v1224_v17 = vld [vmem:[%s1486_s0 + $0x34] sm:$0xf0]  ;;  %v1220_v18 = vld [vmem:[%s1486_s0 + $0x1c] sm:$0xf]  ;;  %v903_v21 = vor.u32 %v1219_v14, %v900_v15  ;;  %v1295_v25 = vld [vmem:[%s1489_s3 + $0x30] sm:$0xff] }
  0x20   :  { %641 = vmatpush.bf16.msra.mxu2 %v1242_v26  ;;  %v908_v19 = vld [vmem:[%s1486_s0 + $0x38] sm:$0xf0]  ;;  %v907_v22 = vor.u32 %v1224_v17, %v906_v16  ;;  %v1294_v26 = vld [vmem:[%s1489_s3 + $0x28] sm:$0xff]  ;;  %v1291_v35 = vld [vmem:[%s1489_s3 + $0x10] sm:$0xff] }
  0x21   :  { %655 = vmatpush.bf16.msra.mxu3 %v1250_v27  ;;  %v911_v23 = vor.u32 %v1220_v18, %v908_v19  ;;  %v1296_v24 = vld [vmem:[%s1489_s3 + $0x38] sm:$0xff]  ;;  %v1290_v38 = vld [vmem:[%s1489_s3 + $0x8] sm:$0xff]  ;;  %v1297_v13 = vld [vmem:[%s1491_s5] sm:$0xff] }
  0x22   :  { %614 = vmatpush.bf16.msra.mxu0 %v1225_v28  ;;  %v1293_v28 = vld [vmem:[%s1489_s3 + $0x20] sm:$0xff]  ;;  %v1298_v12 = vld [vmem:[%s1491_s5 + $0x8] sm:$0xff] }
  0x23   :  { %628 = vmatpush.bf16.msra.mxu1 %v1233_v29  ;;  %v1304_v29 = vld [vmem:[%s1488_s2] ss:$0 sm:$0xff] }
  0x24   :  { %642 = vmatpush.bf16.msra.mxu2 %v1241_v30  ;;  %v1305_v14 = vld [vmem:[%s1490_s4] ss:$0 sm:$0xff] }
  0x25   :  { %656 = vmatpush.bf16.msra.mxu3 %v1249_v31  ;;  %615 = vmatmul.bf16.vlgmr.msra.gmra.mxu0 %v883_v45  ;;  %v1292_v31 = vld [vmem:[%s1489_s3 + $0x18] sm:$0xff] }
  0x26   :  { %663 = vmatpush.bf16.msrb.mxu0 %v1264_v32  ;;  %629 = vmatmul.bf16.vlgmr.msra.gmra.mxu1 %v887_v47 }
  0x27   :  { %677 = vmatpush.bf16.msrb.mxu1 %v1272_v33  ;;  %643 = vmatmul.bf16.vlgmr.msra.gmra.mxu2 %v891_v44 }
  0x28   :  { %691 = vmatpush.bf16.msrb.mxu2 %v1280_v42  ;;  %657 = vmatmul.bf16.vlgmr.msra.gmra.mxu3 %v895_v46  ;;  %v1289_v42 = vld [vmem:[%s1489_s3] sm:$0xff] }
  0x29   :  { %705 = vmatpush.bf16.msrb.mxu3 %v1288_v43 }
  0x2a   :  { %664 = vmatpush.bf16.msrb.mxu0 %v1263_v48 }
  0x2b   :  { %678 = vmatpush.bf16.msrb.mxu1 %v1271_v49 }
  0x2c   :  { %692 = vmatpush.bf16.msrb.mxu2 %v1279_v50 }
  0x2d   :  { %706 = vmatpush.bf16.msrb.mxu3 %v1287_v51 }
  0x2e   :  { %665 = vmatpush.bf16.msrb.mxu0 %v1262_v52 }
  0x2f   :  { %679 = vmatpush.bf16.msrb.mxu1 %v1270_v53 }
  0x30   :  { %693 = vmatpush.bf16.msrb.mxu2 %v1278_v54 }
  0x31   :  { %707 = vmatpush.bf16.msrb.mxu3 %v1286_v55 }
  0x32   :  { %666 = vmatpush.bf16.msrb.mxu0 %v1261_v56 }
  0x33   :  { %680 = vmatpush.bf16.msrb.mxu1 %v1269_v57 }
  0x34   :  { %694 = vmatpush.bf16.msrb.mxu2 %v1277_v58 }
  0x35   :  { %708 = vmatpush.bf16.msrb.mxu3 %v1285_v59 }
  0x36   :  { %667 = vmatpush.bf16.msrb.mxu0 %v1260_v60 }
  0x37   :  { %681 = vmatpush.bf16.msrb.mxu1 %v1268_v61 }
  0x38   :  { %695 = vmatpush.bf16.msrb.mxu2 %v1276_v62 }
  0x39   :  { %709 = vmatpush.bf16.msrb.mxu3 %v1284_v63 }
  0x3a   :  { %668 = vmatpush.bf16.msrb.mxu0 %v1259_v0 }
  0x3b   :  { %682 = vmatpush.bf16.msrb.mxu1 %v1267_v1 }
  0x3c   :  { %696 = vmatpush.bf16.msrb.mxu2 %v1275_v2 }
  0x3d   :  { %710 = vmatpush.bf16.msrb.mxu3 %v1283_v3 }
  0x3e   :  { %669 = vmatpush.bf16.msrb.mxu0 %v1258_v4 }
  0x3f   :  { %683 = vmatpush.bf16.msrb.mxu1 %v1266_v5 }
  0x40   :  { %697 = vmatpush.bf16.msrb.mxu2 %v1274_v6 }
  0x41   :  { %711 = vmatpush.bf16.msrb.mxu3 %v1282_v7 }
  0x42   :  { %670 = vmatpush.bf16.msrb.mxu0 %v1257_v8 }
  0x43   :  { %684 = vmatpush.bf16.msrb.mxu1 %v1265_v9 }
  0x44   :  { %698 = vmatpush.bf16.msrb.mxu2 %v1273_v10  ;;  %v1300_v10 = vld [vmem:[%s1491_s5 + $0x18] sm:$0xff] }
  0x45   :  { %712 = vmatpush.bf16.msrb.mxu3 %v1281_v11  ;;  %671 = vmatmul.bf16.vlgmr.msrb.gmra.mxu0 %v899_v20  ;;  %v1299_v11 = vld [vmem:[%s1491_s5 + $0x10] sm:$0xff] }
  0x46   :  { %685 = vmatmul.bf16.vlgmr.msrb.gmra.mxu1 %v903_v21  ;;  %796 = vmatpush.bf16.msra.mxu0 %v1296_v24 }
  0x47   :  { %699 = vmatmul.bf16.vlgmr.msrb.gmra.mxu2 %v907_v22  ;;  %863 = vmatpush.bf16.msra.mxu1 %v1300_v10 }
  0x48   :  { %713 = vmatmul.bf16.vlgmr.msrb.gmra.mxu3 %v911_v23 }
  0x4a   :  { %797 = vmatpush.bf16.msra.mxu0 %v1295_v25 }
  0x4b   :  { %864 = vmatpush.bf16.msra.mxu1 %v1299_v11 }
  0x4e   :  { %798 = vmatpush.bf16.msra.mxu0 %v1294_v26 }
  0x4f   :  { %865 = vmatpush.bf16.msra.mxu1 %v1298_v12 }
  0x52   :  { %799 = vmatpush.bf16.msra.mxu0 %v1293_v28  ;;  %v1306_v28 = vld [vmem:[%s1492_s6] ss:$0 sm:$0xff] }
  0x53   :  { %866 = vmatpush.bf16.msra.mxu1 %v1297_v13 }
  0x56   :  { %800 = vmatpush.bf16.msra.mxu0 %v1292_v31 }
  0x5a   :  { %801 = vmatpush.bf16.msra.mxu0 %v1291_v35 }
  0x5e   :  { %802 = vmatpush.bf16.msra.mxu0 %v1290_v38 }
  0x62   :  { %803 = vmatpush.bf16.msra.mxu0 %v1289_v42 }
  0xa2   :  { %v616_v27 = vpop.f32.mrf.mxu0 }
  0xa3   :  { %v630_v30 = vpop.f32.mrf.mxu1  ;;  %v617_v32 = vadd.f32 %v1304_v29, %v616_v27 }
  0xa5   :  { %v631_v36 = vadd.f32 %v630_v30, %v617_v32 }
  0xaa   :  { %v644_v33 = vpop.f32.mrf.mxu2  ;;  %v618_v37 = vpop.f32.mrf.mxu0 }
  0xab   :  { %v658_v34 = vpop.f32.mrf.mxu3  ;;  %v632_v39 = vpop.f32.mrf.mxu1  ;;  %v645_v40 = vadd.f32 %v644_v33, %v631_v36  ;;  %v619_v41 = vadd.f32 %v1304_v29, %v618_v37 }
  0xad   :  { %v659_v45 = vadd.f32 %v658_v34, %v645_v40  ;;  %v633_v46 = vadd.f32 %v632_v39, %v619_v41 }
  0xb2   :  { %v646_v43 = vpop.f32.mrf.mxu2 }
  0xb3   :  { %v660_v44 = vpop.f32.mrf.mxu3  ;;  %v647_v50 = vadd.f32 %v646_v43, %v633_v46 }
  0xb5   :  { %v661_v54 = vadd.f32 %v660_v44, %v647_v50 }
  0xc2   :  { %v672_v47 = vpop.f32.mrf.mxu0 }
  0xc3   :  { %v673_v48 = vadd.f32 %v672_v47, %v659_v45  ;;  %v686_v49 = vpop.f32.mrf.mxu1 }
  0xc5   :  { %v687_v51 = vadd.f32 %v686_v49, %v673_v48 }
  0xca   :  { %v700_v52 = vpop.f32.mrf.mxu2  ;;  %v674_v56 = vpop.f32.mrf.mxu0 }
  0xcb   :  { %v714_v53 = vpop.f32.mrf.mxu3  ;;  %v701_v55 = vadd.f32 %v700_v52, %v687_v51  ;;  %v675_v58 = vadd.f32 %v674_v56, %v661_v54  ;;  %v688_v59 = vpop.f32.mrf.mxu1 }
  0xcd   :  { %v715_v57 = vadd.f32 %v714_v53, %v701_v55  ;;  %v689_v61 = vadd.f32 %v688_v59, %v675_v58 }
  0xcf   :  { %v719_v60 = vmul.f32 0.5, %v715_v57 }
  0xd1   :  { %1307 = vtanh.f32 %v719_v60 }
  0xd2   :  { %v702_v62 = vpop.f32.mrf.mxu2 }
  0xd3   :  { %v703_v63 = vadd.f32 %v702_v62, %v689_v61  ;;  %v716_v0 = vpop.f32.mrf.mxu3 }
  0xd5   :  { %v717_v1 = vadd.f32 %v716_v0, %v703_v63 }
  0xd7   :  { %v720_v2 = vmul.f32 0.5, %v717_v1  ;;  %v1308_v3 = vpop.eup %1307 }
  0xd8   :  { %v723_v4 = vadd.f32 1.0, %v1308_v3 }
  0xd9   :  { %1309 = vtanh.f32 %v720_v2 }
  0xda   :  { %v725_v7 = vmul.f32 0.5, %v723_v4 }
  0xdf   :  { %v1310_v5 = vpop.eup %1309 }
  0xe0   :  { %v724_v6 = vadd.f32 1.0, %v1310_v5 }
  0xe2   :  { %v726_v8 = vmul.f32 0.5, %v724_v6 }
  0xe4   :  { %v727_v9 = vpack.c.bf16 %v726_v8, %v725_v7 }
  0xe6   :  { %804 = vmatmul.bf16.vlgmr.msra.gmra.mxu0 %v727_v9 }
 0x163   :  { %v805_v15 = vpop.f32.mrf.mxu0 }
 0x164   :  { %v806_v16 = vadd.f32 %v1305_v14, %v805_v15 }
 0x166   :  { %v810_v17 = vmul.f32 0.5, %v806_v16 }
 0x168   :  { %1311 = vtanh.f32 %v810_v17 }
 0x16b   :  { %v807_v18 = vpop.f32.mrf.mxu0 }
 0x16c   :  { %v808_v19 = vadd.f32 %v1305_v14, %v807_v18 }
 0x16e   :  { %v811_v20 = vmul.f32 0.5, %v808_v19  ;;  %v1312_v21 = vpop.eup %1311 }
 0x16f   :  { %v814_v22 = vadd.f32 1.0, %v1312_v21 }
 0x170   :  { %1313 = vtanh.f32 %v811_v20 }
 0x171   :  { %v816_v25 = vmul.f32 0.5, %v814_v22 }
 0x176   :  { %v1314_v23 = vpop.eup %1313 }
 0x177   :  { %v815_v24 = vadd.f32 1.0, %v1314_v23 }
 0x179   :  { %v817_v26 = vmul.f32 0.5, %v815_v24 }
 0x17b   :  { %v818_v27 = vpack.c.bf16 %v817_v26, %v816_v25 }
 0x17d   :  { %1216 = vmatmul.msk.bf16.vlgmr.msra.gmra.mxu1 %vm855_vm0, %v818_v27 }
 0x1fa   :  { %v868_v29 = vpop.f32.mrf.mxu1 }
 0x1fb   :  { %v869_v30 = vadd.f32 %v1306_v28, %v868_v29 }
 0x1fd   :  { %873 = vst [vmem:[%s1493_s7] sm:$0xff] %v869_v30 }
 0x202   :  { %v870_v31 = vpop.f32.mrf.mxu1 }
 0x203   :  { %v871_v32 = vadd.f32 %v1306_v28, %v870_v31 }
 0x205   :  { %874 = vst [vmem:[%s1493_s7 + $0x8] sm:$0xff] %v871_v32 }
 0x206   :  { %879 = vsyncpa [#allocation3], 1 }

</bundles_post_ra>
